<compile_context>
chip_gen: v7x
topology: tpu7x:2x2x1
jax: 0.10.0
libtpu: 0.0.40
codegen_flags: <defaults>
</compile_context>

<pallas_src>
import functools
import math

import jax
import jax.numpy as jnp
from jax.experimental import pallas as pl
from jax.experimental.pallas import tpu as pltpu


def _round_up(x, m):
    return (x + m - 1) // m * m


_GATHER_CHUNK = 1024  # HW chunk for the one-hot gather (bounds VMEM temporaries)


# ----------------------------------------------------------------------------
# Fused kernel: tiled weighted-MSE partial sums + (last step of j==0) gather.
# ----------------------------------------------------------------------------
def _loss_fused_kernel(pred_ref, gt_ref, feat_ref, ind_ref,
                       gath_ref, hm_parts_ref,
                       *, log_power, n_rows, n_cols,
                       needs_row_mask, needs_col_mask):
    j = pl.program_id(0)              # column-block index (parallel axis)
    i = pl.program_id(1)              # row-block index (reduction axis)
    ni = pl.num_programs(1)
    nj = pl.num_programs(0)
    tm, tn = pred_ref.shape

    # ---- per-column-block init (first reduction step) ----
    @pl.when(i == 0)
    def _():
        hm_parts_ref[...] = jnp.zeros_like(hm_parts_ref)
        gath_ref[...] = jnp.zeros_like(gath_ref)      # keeps j!=0 blocks defined

    # ---- weighted-MSE partial sums folded to a single (8, 128) vreg ----
    def accumulate(masked):
        p = pred_ref[...].astype(jnp.float32)
        g = gt_ref[...].astype(jnp.float32)
        if masked:                                     # edge tiles only
            valid = None
            if needs_row_mask:
                rows = jax.lax.broadcasted_iota(jnp.int32, (tm, tn), 0) + i * tm
                valid = rows < n_rows
            if needs_col_mask:
                cols = jax.lax.broadcasted_iota(jnp.int32, (tm, tn), 1) + j * tn
                cm = cols < n_cols
                valid = cm if valid is None else jnp.logical_and(valid, cm)
            p = jnp.where(valid, p, 0.0)
            g = jnp.where(valid, g, 0.0)
        d = p - g
        contrib = d * d * jnp.exp(g * jnp.float32(log_power))   # power ** gt
        # fold lane groups then sublane groups (aligned static slices, VALU only)
        part = contrib[:, :128]
        for gg in range(1, tn // 128):
            part = part + contrib[:, gg * 128:(gg + 1) * 128]
        folded = part[:8, :]
        for s in range(1, tm // 8):
            folded = folded + part[s * 8:(s + 1) * 8, :]
        hm_parts_ref[0] = hm_parts_ref[0] + folded

    if needs_row_mask or needs_col_mask:
        conds = []
        if needs_row_mask:
            conds.append(i == ni - 1)
        if needs_col_mask:
            conds.append(j == nj - 1)
        is_edge = conds[0]
        for c in conds[1:]:
            is_edge = jnp.logical_or(is_edge, c)

        @pl.when(is_edge)
        def _():
            accumulate(masked=True)

        @pl.when(jnp.logical_not(is_edge))
        def _():
            accumulate(masked=False)
    else:
        accumulate(masked=False)

    # ---- gather: chunked one-hot matmul, off the pipeline prologue ----
    @pl.when(jnp.logical_and(j == 0, i == ni - 1))
    def _():
        n_b, n_c, hw = feat_ref.shape
        k = ind_ref.shape[2]
        for b in range(n_b):                           # small static batch loop
            idx = ind_ref[b]                           # (1, K) int32
            gb = jnp.zeros((n_c, k), jnp.float32)
            for c0 in range(0, hw, _GATHER_CHUNK):
                ch = min(_GATHER_CHUNK, hw - c0)
                ids = jax.lax.broadcasted_iota(jnp.int32, (ch, k), 0) + c0
                onehot = (ids == idx).astype(jnp.float32)           # (ch, K)
                fchunk = feat_ref[b, :, c0:c0 + ch].astype(jnp.float32)  # (C, ch)
                gb = gb + jnp.dot(fchunk, onehot,
                                  preferred_element_type=jnp.float32)
            gath_ref[0, b, :, :] = gb


# ----------------------------------------------------------------------------
# AngleConstraintLoss — vectorized (no 16-step python loop).
# TODO(synk): atan2/sin/cos on tiny (B, 16)/(B, 18) tensors stay in plain JAX
#             (atan2 has no guaranteed Mosaic lowering); the gather feeding it
#             runs inside the Pallas kernel.
# ----------------------------------------------------------------------------
_THRESHOLDS = jnp.array(
    [2.0919, 1.5026, 1.6009, 2.1762, 2.326, 2.1743, 2.0768, 1.9951,
     2.0089, 1.9652, 2.1529, 2.5862, 2.6576, 2.5778, 2.7211, 2.59],
    dtype=jnp.float32)


def angle_constraint_loss(centers, gathered_bck):
    # gathered_bck: (B, 2, K) with channels [x, y]; [:, :, :18] upper, 18: lower
    up_x, up_y = gathered_bck[:, 0, :18], gathered_bck[:, 1, :18]
    lo_x, lo_y = gathered_bck[:, 0, 18:], gathered_bck[:, 1, 18:]
    thetas = (jnp.arctan2(up_y, up_x) + jnp.arctan2(lo_y, lo_x)) / 2.0   # (B, 18)

    center_vecs = centers[:, 1:, :] - centers[:, :-1, :]
    betas = jnp.arctan2(center_vecs[:, :, 1], center_vecs[:, :, 0])      # (B, >=16)
    beta_i = betas[:, :16]
    beta_next = jnp.concatenate([betas[:, 1:16], betas[:, 15:16]], axis=1)
    beta_avg = (beta_i + beta_next) / 2.0 + jnp.pi / 2                   # (B, 16)

    ang = beta_avg - thetas[:, 1:17]
    diff = jnp.arctan2(jnp.sin(ang), jnp.cos(ang))                       # normalize
    thr = _THRESHOLDS * (jnp.pi / 180.0)                                 # as in spec
    loss = jnp.abs(diff)
    loss = loss * (loss > thr[None, :]).astype(loss.dtype)
    # sum_i mean_b(loss_i) / 16  ==  mean over (B, 16)
    return jnp.mean(loss)


# ----------------------------------------------------------------------------
# LossAll
# ----------------------------------------------------------------------------
def loss_all(pr_decs, gt_batch, lambda_hm=1.0, lambda_vec=1.0,
             lambda_constraint=0.5, power=50.0):
    hm_pred = pr_decs['hm']
    hm_gt = gt_batch['hm']
    assert hm_pred.shape == hm_gt.shape
    B, C_hm, H, W = hm_pred.shape
    R, HW_hm = B * C_hm, H * W
    pred2 = hm_pred.reshape(R, HW_hm)                  # free view of NCHW
    gt2 = hm_gt.reshape(R, HW_hm)

    vec = pr_decs['vec_ind']                           # NCHW
    Bv, C, Hv, Wv = vec.shape
    HW = Hv * Wv
    feat = vec.reshape(Bv, C, HW)                      # free view; HW lane-dense
    ind = gt_batch['ind'].astype(jnp.int32).reshape(Bv, 1, -1)
    K = ind.shape[-1]

    # MSE tiles: lane-dense, <= ~16 MiB double-buffered (fits v7x's 64 MiB VMEM
    # with headroom; past the ~85% HBM-roofline size on v5e/v6e).
    TM = min(512, _round_up(R, 8))
    TN = min(2048, _round_up(HW_hm, 128))
    ni = pl.cdiv(R, TM)
    nj = pl.cdiv(HW_hm, TN)

    kernel = functools.partial(_loss_fused_kernel,
                               log_power=float(math.log(power)),
                               n_rows=R, n_cols=HW_hm,
                               needs_row_mask=(R % TM != 0),
                               needs_col_mask=(HW_hm % TN != 0))

    gathered_all, hm_parts = pl.pallas_call(
        kernel,
        out_shape=(jax.ShapeDtypeStruct((nj, Bv, C, K), jnp.float32),
                   jax.ShapeDtypeStruct((nj, 8, 128), jnp.float32)),
        grid=(nj, ni),
        in_specs=[
            pl.BlockSpec((TM, TN), lambda j, i: (i, j)),        # hm pred tile
            pl.BlockSpec((TM, TN), lambda j, i: (i, j)),        # hm gt tile
            pl.BlockSpec((Bv, C, HW), lambda j, i: (0, 0, 0)),  # feat (resident)
            pl.BlockSpec((Bv, 1, K), lambda j, i: (0, 0, 0)),   # ind
        ],
        out_specs=(
            pl.BlockSpec((1, Bv, C, K), lambda j, i: (j, 0, 0, 0)),  # gathered
            pl.BlockSpec((1, 8, 128), lambda j, i: (j, 0, 0)),       # hm partials
        ),
        compiler_params=pltpu.CompilerParams(
            dimension_semantics=("parallel", "arbitrary"),
            vmem_limit_bytes=48 * 1024 * 1024),
    )(pred2, gt2, feat, ind)

    # Final tiny reductions (XLA-fused in the wrapper).
    hm_loss = jnp.sum(hm_parts) / jnp.float32(R * HW_hm)
    gathered = gathered_all[0]                                   # (B, C, K)

    target_t = jnp.transpose(gt_batch['vec_ind'].astype(jnp.float32),
                             (0, 2, 1))                          # (B, C, K)
    l1 = jnp.sum(jnp.abs(gathered - target_t))
    mask_sum = jnp.sum(gt_batch['reg_mask'].astype(jnp.float32))
    vec_loss = l1 / (mask_sum + 0.0001)

    constraint_loss = jnp.float32(0.0)
    if 'peak_points' in pr_decs and lambda_constraint > 0:
        constraint_loss = angle_constraint_loss(pr_decs['peak_points'], gathered)

    loss_dec = (lambda_hm * hm_loss + lambda_vec * vec_loss
                + lambda_constraint * constraint_loss)
    return loss_dec, hm_loss, vec_loss, constraint_loss


if __name__ == "__main__":
    key = jax.random.PRNGKey(0)
    ks = jax.random.split(key, 7)

    B, C_HM, H, W = 2, 4, 16, 16
    K = 36                                    # 18 upper + 18 lower directions
    N_CENTERS = 17                            # peak points -> 16 segment angles

    pr_hm = jax.random.uniform(ks[0], (B, C_HM, H, W), jnp.float32)
    gt_hm = jax.random.uniform(ks[1], (B, C_HM, H, W), jnp.float32)
    pr_vec = jax.random.normal(ks[2], (B, 2, H, W), jnp.float32)
    ind = jax.random.randint(ks[3], (B, K), 0, H * W, jnp.int32)
    gt_vec = jax.random.normal(ks[4], (B, K, 2), jnp.float32)
    reg_mask = (jax.random.uniform(ks[5], (B, K)) > 0.3).astype(jnp.float32)
    peak_points = jax.random.normal(ks[6], (B, N_CENTERS, 2), jnp.float32)

    pr_decs = {'hm': pr_hm, 'vec_ind': pr_vec, 'peak_points': peak_points}
    gt_batch = {'hm': gt_hm, 'ind': ind, 'vec_ind': gt_vec, 'reg_mask': reg_mask}

    out = loss_all(pr_decs, gt_batch)
    out = jax.block_until_ready(out)
    print("KERNEL_OK")
</pallas_src>

<mosaic_0001>
module attributes {stable_mosaic.version = 11 : i64} {
  func.func @_loss_fused_kernel(%arg0: i32, %arg1: i32, %arg2: memref<8x256xf32, #tpu.memory_space<vmem>>, %arg3: memref<8x256xf32, #tpu.memory_space<vmem>>, %arg4: memref<2x2x256xf32, #tpu.memory_space<vmem>>, %arg5: memref<2x1x36xi32, #tpu.memory_space<vmem>>, %arg6: memref<1x2x2x36xf32, #tpu.memory_space<vmem>>, %arg7: memref<1x8x128xf32, #tpu.memory_space<vmem>>) attributes {dimension_semantics = [#tpu.dimension_semantics<parallel>, #tpu.dimension_semantics<arbitrary>], iteration_bounds = array<i64: 1, 1>, scalar_prefetch = 0 : i64, scratch_operands = 0 : i64, tpu.core_type = #tpu.core_type<tc>, window_params = [{transform_indices = @transform_0, window_bounds = array<i64: 8, 256>}, {transform_indices = @transform_1, window_bounds = array<i64: 8, 256>}, {pipeline_mode = #tpu.pipeline_mode<synchronous>, transform_indices = @transform_2, window_bounds = array<i64: 2, 2, 256>}, {pipeline_mode = #tpu.pipeline_mode<synchronous>, transform_indices = @transform_3, window_bounds = array<i64: 2, 1, 36>}, {transform_indices = @transform_4, window_bounds = array<i64: 1, 2, 2, 36>}, {transform_indices = @transform_5, window_bounds = array<i64: 1, 8, 128>}]} {
    %c0_i32 = arith.constant 0 : i32
    %0 = arith.cmpi eq, %arg1, %c0_i32 : i32
    %1 = arith.extui %0 : i1 to i32
    %c0_i32_0 = arith.constant 0 : i32
    %2 = arith.cmpi ne, %1, %c0_i32_0 : i32
    scf.if %2 {
      %cst_13 = arith.constant 0.000000e+00 : f32
      %25 = vector.broadcast %cst_13 : f32 to vector<1x8x128xf32>
      %c0_14 = arith.constant 0 : index
      %c0_15 = arith.constant 0 : index
      %c0_16 = arith.constant 0 : index
      %26 = vector.load %arg7[%c0_14, %c0_15, %c0_16] : memref<1x8x128xf32, #tpu.memory_space<vmem>>, vector<1x8x128xf32>
      tpu.vector_store %arg7[%c0_14, %c0_15, %c0_16], %25 {strides = array<i32>} : memref<1x8x128xf32, #tpu.memory_space<vmem>>, vector<1x8x128xf32>,
      %cst_17 = arith.constant 0.000000e+00 : f32
      %27 = vector.broadcast %cst_17 : f32 to vector<1x2x2x36xf32>
      %c0_18 = arith.constant 0 : index
      %c0_19 = arith.constant 0 : index
      %c0_20 = arith.constant 0 : index
      %c0_21 = arith.constant 0 : index
      %28 = vector.load %arg6[%c0_18, %c0_19, %c0_20, %c0_21] : memref<1x2x2x36xf32, #tpu.memory_space<vmem>>, vector<1x2x2x36xf32>
      tpu.vector_store %arg6[%c0_18, %c0_19, %c0_20, %c0_21], %27 {strides = array<i32>} : memref<1x2x2x36xf32, #tpu.memory_space<vmem>>, vector<1x2x2x36xf32>,
    } else {
    }
    %c0 = arith.constant 0 : index
    %c0_1 = arith.constant 0 : index
    %3 = vector.load %arg2[%c0, %c0_1] : memref<8x256xf32, #tpu.memory_space<vmem>>, vector<8x256xf32>
    %c0_2 = arith.constant 0 : index
    %c0_3 = arith.constant 0 : index
    %4 = vector.load %arg3[%c0_2, %c0_3] : memref<8x256xf32, #tpu.memory_space<vmem>>, vector<8x256xf32>
    %5 = arith.subf %3, %4 : vector<8x256xf32>
    %6 = arith.mulf %5, %5 : vector<8x256xf32>
    %cst = arith.constant 3.91202307 : f32
    %7 = vector.broadcast %cst : f32 to vector<8x256xf32>
    %8 = arith.mulf %4, %7 : vector<8x256xf32>
    %9 = math.exp %8 : vector<8x256xf32>
    %10 = arith.mulf %6, %9 : vector<8x256xf32>
    %11 = vector.extract_strided_slice %10 {offsets = [0, 0], sizes = [8, 128], strides = [1, 1]} : vector<8x256xf32> to vector<8x128xf32>
    %12 = vector.extract_strided_slice %10 {offsets = [0, 128], sizes = [8, 128], strides = [1, 1]} : vector<8x256xf32> to vector<8x128xf32>
    %13 = arith.addf %11, %12 : vector<8x128xf32>
    %c0_4 = arith.constant 0 : index
    %c0_5 = arith.constant 0 : index
    %c0_6 = arith.constant 0 : index
    %14 = vector.load %arg7[%c0_4, %c0_5, %c0_6] : memref<1x8x128xf32, #tpu.memory_space<vmem>>, vector<1x8x128xf32>
    %15 = vector.shape_cast %14 : vector<1x8x128xf32> to vector<8x128xf32>
    %16 = arith.addf %15, %13 : vector<8x128xf32>
    %c0_7 = arith.constant 0 : index
    %c0_8 = arith.constant 0 : index
    %c0_9 = arith.constant 0 : index
    %17 = vector.load %arg7[%c0_7, %c0_8, %c0_9] : memref<1x8x128xf32, #tpu.memory_space<vmem>>, vector<1x8x128xf32>
    %18 = vector.shape_cast %17 : vector<1x8x128xf32> to vector<8x128xf32>
    %19 = vector.shape_cast %16 : vector<8x128xf32> to vector<1x8x128xf32>
    tpu.vector_store %arg7[%c0_7, %c0_8, %c0_9], %19 {strides = array<i32>} : memref<1x8x128xf32, #tpu.memory_space<vmem>>, vector<1x8x128xf32>,
    %c0_i32_10 = arith.constant 0 : i32
    %20 = arith.cmpi eq, %arg0, %c0_i32_10 : i32
    %c0_i32_11 = arith.constant 0 : i32
    %21 = arith.cmpi eq, %arg1, %c0_i32_11 : i32
    %22 = arith.andi %20, %21 : i1
    %23 = arith.extui %22 : i1 to i32
    %c0_i32_12 = arith.constant 0 : i32
    %24 = arith.cmpi ne, %23, %c0_i32_12 : i32
    scf.if %24 {
      %c0_13 = arith.constant 0 : index
      %c0_14 = arith.constant 0 : index
      %c0_15 = arith.constant 0 : index
      %25 = vector.load %arg5[%c0_13, %c0_14, %c0_15] : memref<2x1x36xi32, #tpu.memory_space<vmem>>, vector<1x1x36xi32>
      %26 = vector.shape_cast %25 : vector<1x1x36xi32> to vector<1x36xi32>
      %cst_16 = arith.constant 0.000000e+00 : f32
      %27 = vector.broadcast %cst_16 : f32 to vector<2x36xf32>
      %28 = tpu.iota {dimensions = array<i32: 0>} : vector<256x36xi32>
      %c0_i32_17 = arith.constant 0 : i32
      %29 = vector.broadcast %c0_i32_17 : i32 to vector<256x36xi32>
      %30 = arith.addi %28, %29 : vector<256x36xi32>
      %31 = vector.broadcast %26 : vector<1x36xi32> to vector<256x36xi32>
      %32 = arith.cmpi eq, %30, %31 : vector<256x36xi32>
      %33 = arith.extui %32 : vector<256x36xi1> to vector<256x36xi32>
      %34 = arith.sitofp %33 : vector<256x36xi32> to vector<256x36xf32>
      %c0_18 = arith.constant 0 : index
      %c0_19 = arith.constant 0 : index
      %c0_20 = arith.constant 0 : index
      %35 = vector.load %arg4[%c0_18, %c0_19, %c0_20] : memref<2x2x256xf32, #tpu.memory_space<vmem>>, vector<1x2x256xf32>
      %36 = vector.shape_cast %35 : vector<1x2x256xf32> to vector<2x256xf32>
      %cst_21 = arith.constant dense<0.000000e+00> : vector<2x36xf32>
      %37 = tpu.matmul %36, %34, %cst_21 {dimension_numbers = #tpu.dot_dimension_numbers<[1], [0], [0], [1], [0, 0, 1, 1], [], []>} : vector<2x256xf32>, vector<256x36xf32>, vector<2x36xf32> -> vector<2x36xf32>
      %38 = arith.addf %27, %37 : vector<2x36xf32>
      %c0_22 = arith.constant 0 : index
      %c0_23 = arith.constant 0 : index
      %c0_24 = arith.constant 0 : index
      %c0_25 = arith.constant 0 : index
      %39 = vector.load %arg6[%c0_22, %c0_23, %c0_24, %c0_25] : memref<1x2x2x36xf32, #tpu.memory_space<vmem>>, vector<1x1x2x36xf32>
      %40 = vector.shape_cast %39 : vector<1x1x2x36xf32> to vector<2x36xf32>
      %41 = vector.shape_cast %38 : vector<2x36xf32> to vector<1x1x2x36xf32>
      tpu.vector_store %arg6[%c0_22, %c0_23, %c0_24, %c0_25], %41 {strides = array<i32>} : memref<1x2x2x36xf32, #tpu.memory_space<vmem>>, vector<1x1x2x36xf32>,
      %c1 = arith.constant 1 : index
      %c0_26 = arith.constant 0 : index
      %c0_27 = arith.constant 0 : index
      %42 = vector.load %arg5[%c1, %c0_26, %c0_27] : memref<2x1x36xi32, #tpu.memory_space<vmem>>, vector<1x1x36xi32>
      %43 = vector.shape_cast %42 : vector<1x1x36xi32> to vector<1x36xi32>
      %cst_28 = arith.constant 0.000000e+00 : f32
      %44 = vector.broadcast %cst_28 : f32 to vector<2x36xf32>
      %45 = tpu.iota {dimensions = array<i32: 0>} : vector<256x36xi32>
      %c0_i32_29 = arith.constant 0 : i32
      %46 = vector.broadcast %c0_i32_29 : i32 to vector<256x36xi32>
      %47 = arith.addi %45, %46 : vector<256x36xi32>
      %48 = vector.broadcast %43 : vector<1x36xi32> to vector<256x36xi32>
      %49 = arith.cmpi eq, %47, %48 : vector<256x36xi32>
      %50 = arith.extui %49 : vector<256x36xi1> to vector<256x36xi32>
      %51 = arith.sitofp %50 : vector<256x36xi32> to vector<256x36xf32>
      %c1_30 = arith.constant 1 : index
      %c0_31 = arith.constant 0 : index
      %c0_32 = arith.constant 0 : index
      %52 = vector.load %arg4[%c1_30, %c0_31, %c0_32] : memref<2x2x256xf32, #tpu.memory_space<vmem>>, vector<1x2x256xf32>
      %53 = vector.shape_cast %52 : vector<1x2x256xf32> to vector<2x256xf32>
      %cst_33 = arith.constant dense<0.000000e+00> : vector<2x36xf32>
      %54 = tpu.matmul %53, %51, %cst_33 {dimension_numbers = #tpu.dot_dimension_numbers<[1], [0], [0], [1], [0, 0, 1, 1], [], []>} : vector<2x256xf32>, vector<256x36xf32>, vector<2x36xf32> -> vector<2x36xf32>
      %55 = arith.addf %44, %54 : vector<2x36xf32>
      %c0_34 = arith.constant 0 : index
      %c1_35 = arith.constant 1 : index
      %c0_36 = arith.constant 0 : index
      %c0_37 = arith.constant 0 : index
      %56 = vector.load %arg6[%c0_34, %c1_35, %c0_36, %c0_37] : memref<1x2x2x36xf32, #tpu.memory_space<vmem>>, vector<1x1x2x36xf32>
      %57 = vector.shape_cast %56 : vector<1x1x2x36xf32> to vector<2x36xf32>
      %58 = vector.shape_cast %55 : vector<2x36xf32> to vector<1x1x2x36xf32>
      tpu.vector_store %arg6[%c0_34, %c1_35, %c0_36, %c0_37], %58 {strides = array<i32>} : memref<1x2x2x36xf32, #tpu.memory_space<vmem>>, vector<1x1x2x36xf32>,
    } else {
    }
    return
  }
  func.func @transform_0(%arg0: i32, %arg1: i32) -> (i32, i32) {
    %c0_i32 = arith.constant 0 : i32
    return %arg1, %arg0 : i32, i32
  }
  func.func @transform_1(%arg0: i32, %arg1: i32) -> (i32, i32) {
    %c0_i32 = arith.constant 0 : i32
    return %arg1, %arg0 : i32, i32
  }
  func.func @transform_2(%arg0: i32, %arg1: i32) -> (i32, i32, i32) {
    %c0_i32 = arith.constant 0 : i32
    %c0_i32_0 = arith.constant 0 : i32
    %c0_i32_1 = arith.constant 0 : i32
    %c0_i32_2 = arith.constant 0 : i32
    return %c0_i32, %c0_i32_0, %c0_i32_1 : i32, i32, i32
  }
  func.func @transform_3(%arg0: i32, %arg1: i32) -> (i32, i32, i32) {
    %c0_i32 = arith.constant 0 : i32
    %c0_i32_0 = arith.constant 0 : i32
    %c0_i32_1 = arith.constant 0 : i32
    %c0_i32_2 = arith.constant 0 : i32
    return %c0_i32, %c0_i32_0, %c0_i32_1 : i32, i32, i32
  }
  func.func @transform_4(%arg0: i32, %arg1: i32) -> (i32, i32, i32, i32) {
    %c0_i32 = arith.constant 0 : i32
    %c0_i32_0 = arith.constant 0 : i32
    %c0_i32_1 = arith.constant 0 : i32
    %c0_i32_2 = arith.constant 0 : i32
    return %arg0, %c0_i32, %c0_i32_0, %c0_i32_1 : i32, i32, i32, i32
  }
  func.func @transform_5(%arg0: i32, %arg1: i32) -> (i32, i32, i32) {
    %c0_i32 = arith.constant 0 : i32
    %c0_i32_0 = arith.constant 0 : i32
    %c0_i32_1 = arith.constant 0 : i32
    return %arg0, %c0_i32, %c0_i32_0 : i32, i32, i32
  }
}

</mosaic_0001>

<bundles_post_ra>
// kernel: tpu_custom_call.1
= control target key start
LH: loop header
LB: loop body
LE: loop exit
PB: predicated region body
PF: predicated region fallthrough
CT: control target
= control target key end

     0   :  { %11 = vsyncpa [#allocation3], 0  ;;  %s1226_s0 = inlined_call_operand.hbm [shape: f32[8,256], index: 0, kind: input, shape index: {}]   ;;  %s1227_s1 = inlined_call_operand.hbm [shape: f32[8,256], index: 1, kind: input, shape index: {}]   ;;  %s1228_s2 = inlined_call_operand.hbm [shape: f32[2,2,256], index: 2, kind: input, shape index: {}]   ;;  %s1229_s3 = inlined_call_operand.vmem [shape: s32[2,1,36], index: 3, kind: input, shape index: {}]   ;;  %s1230_s4 = inlined_call_operand.hbm [shape: f32[1,2,2,36], index: 4, kind: output, shape index: {0}]   ;;  %s1231_s5 = inlined_call_operand.hbm [shape: f32[1,8,128], index: 5, kind: output, shape index: {1}]  }
   0x1   :  { %12 = vsyncpa [#allocation6], 0 }
   0x2   :  { %13 = vsyncpa [#allocation4], 0 }
   0x3   :  { %14 = vsyncpa [#allocation10], 0  ;;  %s928_s18 = smov [#allocation5]   ;;  %s929_s20 = smov [#allocation2]  }
   0x4   :  { %s31_s19 = sshll.u32 %s928_s18, 4  ;;  %s21_s21 = sshll.u32 %s929_s20, 4  ;;  %s32_s19 = int_to_ptr.vmem [resolvable:$true] %s31_s19  ;;  %s22_s21 = int_to_ptr.vmem [resolvable:$true] %s21_s21 }
   0x5   :  { %s810_s24 = scalar_lea.hbm %s1227_s1, 256 }
   0x6   :  { %p811_p0 = scmp.ne.s32.totalorder %s1227_s1, %s810_s24  ;;  %p814_p1 = scmp.lt.u32.totalorder %s810_s24, %s1227_s1 }
   0x8   :  { %p816_p2 = pnand %p814_p1, %p811_p0 }
   0xa   :  { %819 = shalt.err (!%p816_p2)
}
   0xb   :  { %s820_s29 = scalar_lea.vmem %s32_s19, 256  ;;  %p825_p4 = scmp.lt.s32.totalorder %s32_s19, %s32_s19 }
   0xc   :  { %p821_p3 = scmp.ne.s32.totalorder %s32_s19, %s820_s29  ;;  %p826_p5 = scmp.lt.s32.totalorder %s820_s29, %s820_s29 }
   0xe   :  { %p827_p6 = por %p826_p5, %p825_p4 }
  0x10   :  { %p828_p7 = pnand %p827_p6, %p821_p3 }
  0x12   :  { %831 = shalt.err (!%p828_p7)
}
  0x13   :  { %34 = dma.hbm_to_vmem [thread:$0]  %s1227_s1, 256, %s32_s19, [#allocation6]  }
  0x14   :  { %s832_s9 = scalar_lea.hbm %s1226_s0, 256 }
  0x15   :  { %p833_p8 = scmp.ne.s32.totalorder %s1226_s0, %s832_s9  ;;  %p836_p9 = scmp.lt.u32.totalorder %s832_s9, %s1226_s0 }
  0x17   :  { %p838_p10 = pnand %p836_p9, %p833_p8 }
  0x19   :  { %841 = shalt.err (!%p838_p10)
}
  0x1a   :  { %s842_s14 = scalar_lea.vmem %s22_s21, 256  ;;  %p847_p12 = scmp.lt.s32.totalorder %s22_s21, %s22_s21 }
  0x1b   :  { %p843_p11 = scmp.ne.s32.totalorder %s22_s21, %s842_s14  ;;  %p848_p13 = scmp.lt.s32.totalorder %s842_s14, %s842_s14 }
  0x1d   :  { %p849_p0 = por %p848_p13, %p847_p12 }
  0x1f   :  { %p850_p1 = pnand %p849_p0, %p843_p11 }
  0x21   :  { %853 = shalt.err (!%p850_p1)
}
  0x22   :  { %24 = dma.hbm_to_vmem [thread:$0]  %s1226_s0, 256, %s22_s21, [#allocation3]  }
  0x23   :  { %s930_s16 = smov [#allocation7]   ;;  %s854_s20 = scalar_lea.hbm %s1228_s2, 128 }
  0x24   :  { %s40_s17 = sshll.u32 %s930_s16, 4  ;;  %p855_p2 = scmp.ne.s32.totalorder %s1228_s2, %s854_s20  ;;  %s41_s17 = int_to_ptr.vmem [resolvable:$true] %s40_s17 }
  0x25   :  { %p858_p3 = scmp.lt.u32.totalorder %s854_s20, %s1228_s2 }
  0x27   :  { %p860_p4 = pnand %p858_p3, %p855_p2 }
  0x29   :  { %863 = shalt.err (!%p860_p4)
}
  0x2a   :  { %s864_s26 = scalar_lea.vmem %s41_s17, 128  ;;  %p869_p6 = scmp.lt.s32.totalorder %s41_s17, %s41_s17 }
  0x2b   :  { %p865_p5 = scmp.ne.s32.totalorder %s41_s17, %s864_s26  ;;  %p870_p7 = scmp.lt.s32.totalorder %s864_s26, %s864_s26 }
  0x2d   :  { %p871_p8 = por %p870_p7, %p869_p6 }
  0x2f   :  { %p872_p9 = pnand %p871_p8, %p865_p5 }
  0x31   :  { %875 = shalt.err (!%p872_p9)
}
  0x32   :  { %s931_s0 = smov 64   ;;  %s932_s21 = smov 4  }
  0x33   :  { %46 = dma.hbm_to_vmem [thread:$0]  %s1228_s2, 128, %s41_s17, [#allocation6], %s931_s0, %s931_s0, %s932_s21  }
  0x34   :  { %920 = dma.done.wait [#allocation3], 256  }
  0x35   :  { %921 = vsyncadd [#allocation3], 4294967040 }
  0x36   :  { %922 = dma.done.wait [#allocation6], 384  }
  0x37   :  { %923 = vsyncadd [#allocation6], 4294966912  ;;  %v92_v0 = vlaneseq  ;;  %v1015_v7 = vld [vmem:[%s1229_s3] ss:$0 sm:$0xff]  ;;  %v1020_v8 = vld [vmem:[%s1229_s3 + $0x1] ss:$0 sm:$0xff] }
  0x38   :  { %v933_v11 = vmov 1.0|1.0   ;;  %v1097_v26 = vld.sshfl [vmem:[#allocation7] sm:$0x33 pattern:$0x76325410] }
  0x39   :  { %v1005_v1 = vshrl.u32 %v92_v0, 7  ;;  %v234_v29 = vcombine.high %v1097_v26, %v1097_v26  ;;  %v1120_v30 = vld.sshfl [vmem:[#allocation7 + $0x4] sm:$0x33 pattern:$0x76325410]  ;;  %v68_v40 = vld [vmem:[#allocation5] sm:$0xff] }
  0x3a   :  { %v421_v35 = vcombine.high %v1120_v30, %v1120_v30  ;;  %v69_v41 = vld [vmem:[#allocation5 + $0x8] sm:$0xff]  ;;  %v74_v42 = vmul.f32 3.912023, %v68_v40  ;;  %v66_v46 = vld [vmem:[#allocation2] sm:$0xff]  ;;  %v67_v47 = vld [vmem:[#allocation2 + $0x8] sm:$0xff]  ;;  %v934_v57 = vmov 0.0  }
  0x3b   :  { %v109_v2 = vadd.s32 128, %v1005_v1  ;;  %v110_v3 = vadd.s32 136, %v1005_v1  ;;  %v94_v4 = vadd.s32 8, %v1005_v1  ;;  %v111_v5 = vadd.s32 144, %v1005_v1  ;;  %301 = vmatprep.mubr.f32.mxu0 %v234_v29  ;;  %s935_s3 = smov [#allocation9]  }
  0x3c   :  { %v112_v6 = vadd.s32 152, %v1005_v1  ;;  %v95_v9 = vadd.s32 16, %v1005_v1  ;;  %v96_v10 = vadd.s32 24, %v1005_v1  ;;  %vm129_vm5 = vcmp.eq.s32.totalorder %v1005_v1, %v1015_v7  ;;  %488 = vmatprep.mubr.f32.mxu1 %v421_v35  ;;  %s514_s7 = sshll.u32 %s935_s3, 4  ;;  %s515_s7 = int_to_ptr.vmem [resolvable:$true] %s514_s7 }
  0x3d   :  { %vm145_vm0 = vcmp.eq.s32.totalorder %v109_v2, %v1015_v7  ;;  %vm146_vm1 = vcmp.eq.s32.totalorder %v110_v3, %v1015_v7  ;;  %vm331_vm2 = vcmp.eq.s32.totalorder %v109_v2, %v1020_v8  ;;  %vm332_vm3 = vcmp.eq.s32.totalorder %v110_v3, %v1020_v8  ;;  %s876_s8 = scalar_lea.vmem %s515_s7, 128  ;;  %p881_p11 = scmp.lt.s32.totalorder %s515_s7, %s515_s7 }
  0x3e   :  { %vm731_vm4 = vmpackc.low %vm146_vm1, %vm145_vm0  ;;  %vm130_vm6 = vcmp.eq.s32.totalorder %v94_v4, %v1015_v7  ;;  %vm315_vm7 = vcmp.eq.s32.totalorder %v1005_v1, %v1020_v8  ;;  %vm316_vm8 = vcmp.eq.s32.totalorder %v94_v4, %v1020_v8  ;;  %vm147_vm10 = vcmp.eq.s32.totalorder %v111_v5, %v1015_v7  ;;  %p877_p10 = scmp.ne.s32.totalorder %s515_s7, %s876_s8  ;;  %p882_p12 = scmp.lt.s32.totalorder %s876_s8, %s876_s8 }
  0x3f   :  { %732 = vmatprep.subr.msk.bf16.mxu0 %vm731_vm4, %v933_v11  ;;  %vm763_vm9 = vmpackc.low %vm332_vm3, %vm331_vm2  ;;  %vm148_vm11 = vcmp.eq.s32.totalorder %v112_v6, %v1015_v7  ;;  %v113_v12 = vadd.s32 160, %v1005_v1  ;;  %v114_v13 = vadd.s32 168, %v1005_v1  ;;  %vm333_vm13 = vcmp.eq.s32.totalorder %v111_v5, %v1020_v8 }
  0x40   :  { %764 = vmatprep.subr.msk.bf16.mxu1 %vm763_vm9, %v933_v11  ;;  %vm733_vm12 = vmpackc.low %vm130_vm6, %vm129_vm5  ;;  %vm334_vm14 = vcmp.eq.s32.totalorder %v112_v6, %v1020_v8  ;;  %vm131_vm0 = vcmp.eq.s32.totalorder %v95_v9, %v1015_v7  ;;  %vm132_vm1 = vcmp.eq.s32.totalorder %v96_v10, %v1015_v7  ;;  %v97_v14 = vadd.s32 32, %v1005_v1  ;;  %p883_p13 = por %p882_p12, %p881_p11 }
  0x41   :  { %734 = vmatpush3.bf16.msk.msra.mxu0 %vm733_vm12, %v933_v11  ;;  %vm765_vm15 = vmpackc.low %vm316_vm8, %vm315_vm7  ;;  %v98_v15 = vadd.s32 40, %v1005_v1  ;;  %vm317_vm3 = vcmp.eq.s32.totalorder %v95_v9, %v1020_v8  ;;  %vm318_vm4 = vcmp.eq.s32.totalorder %v96_v10, %v1020_v8  ;;  %vm149_vm6 = vcmp.eq.s32.totalorder %v113_v12, %v1015_v7 }
  0x42   :  { %766 = vmatpush3.bf16.msk.msra.mxu1 %vm765_vm15, %v933_v11  ;;  %vm735_vm2 = vmpackc.low %vm148_vm11, %vm147_vm10  ;;  %vm150_vm7 = vcmp.eq.s32.totalorder %v114_v13, %v1015_v7  ;;  %v115_v16 = vadd.s32 176, %v1005_v1  ;;  %v116_v17 = vadd.s32 184, %v1005_v1  ;;  %vm335_vm9 = vcmp.eq.s32.totalorder %v113_v12, %v1020_v8  ;;  %p884_p0 = pnand %p883_p13, %p877_p10 }
  0x43   :  { %736 = vmatprep.subr.msk.bf16.mxu0 %vm735_vm2, %v933_v11  ;;  %vm767_vm5 = vmpackc.low %vm334_vm14, %vm333_vm13  ;;  %vm336_vm10 = vcmp.eq.s32.totalorder %v114_v13, %v1020_v8  ;;  %vm133_vm12 = vcmp.eq.s32.totalorder %v97_v14, %v1015_v7  ;;  %vm134_vm13 = vcmp.eq.s32.totalorder %v98_v15, %v1015_v7  ;;  %v99_v18 = vadd.s32 48, %v1005_v1 }
  0x44   :  { %768 = vmatprep.subr.msk.bf16.mxu1 %vm767_vm5, %v933_v11  ;;  %vm737_vm8 = vmpackc.low %vm132_vm1, %vm131_vm0  ;;  %v100_v19 = vadd.s32 56, %v1005_v1  ;;  %vm319_vm15 = vcmp.eq.s32.totalorder %v97_v14, %v1020_v8  ;;  %vm320_vm0 = vcmp.eq.s32.totalorder %v98_v15, %v1020_v8  ;;  %vm151_vm2 = vcmp.eq.s32.totalorder %v115_v16, %v1015_v7 }
  0x45   :  { %738 = vmatpush3.bf16.msk.msra.mxu0 %vm737_vm8, %v933_v11  ;;  %vm769_vm11 = vmpackc.low %vm318_vm4, %vm317_vm3  ;;  %vm152_vm3 = vcmp.eq.s32.totalorder %v116_v17, %v1015_v7  ;;  %v117_v20 = vadd.s32 192, %v1005_v1  ;;  %v118_v21 = vadd.s32 200, %v1005_v1  ;;  %vm337_vm5 = vcmp.eq.s32.totalorder %v115_v16, %v1020_v8 }
  0x46   :  { %770 = vmatpush3.bf16.msk.msra.mxu1 %vm769_vm11, %v933_v11  ;;  %vm739_vm14 = vmpackc.low %vm150_vm7, %vm149_vm6  ;;  %vm338_vm6 = vcmp.eq.s32.totalorder %v116_v17, %v1020_v8  ;;  %vm135_vm8 = vcmp.eq.s32.totalorder %v99_v18, %v1015_v7  ;;  %v101_v22 = vadd.s32 64, %v1005_v1  ;;  %v102_v23 = vadd.s32 72, %v1005_v1 }
  0x47   :  { %740 = vmatprep.subr.msk.bf16.mxu0 %vm739_vm14, %v933_v11  ;;  %vm771_vm1 = vmpackc.low %vm336_vm10, %vm335_vm9  ;;  %vm136_vm9 = vcmp.eq.s32.totalorder %v100_v19, %v1015_v7  ;;  %vm321_vm11 = vcmp.eq.s32.totalorder %v99_v18, %v1020_v8  ;;  %vm153_vm14 = vcmp.eq.s32.totalorder %v117_v20, %v1015_v7  ;;  %v119_v24 = vadd.s32 208, %v1005_v1 }
  0x48   :  { %772 = vmatprep.subr.msk.bf16.mxu1 %vm771_vm1, %v933_v11  ;;  %vm741_vm4 = vmpackc.low %vm134_vm13, %vm133_vm12  ;;  %vm322_vm12 = vcmp.eq.s32.totalorder %v100_v19, %v1020_v8  ;;  %v120_v25 = vadd.s32 216, %v1005_v1  ;;  %vm339_vm1 = vcmp.eq.s32.totalorder %v117_v20, %v1020_v8  ;;  %v103_v27 = vadd.s32 80, %v1005_v1 }
  0x49   :  { %742 = vmatpush3.bf16.msk.msra.mxu0 %vm741_vm4, %v933_v11  ;;  %vm773_vm7 = vmpackc.low %vm320_vm0, %vm319_vm15  ;;  %vm154_vm15 = vcmp.eq.s32.totalorder %v118_v21, %v1015_v7  ;;  %vm137_vm4 = vcmp.eq.s32.totalorder %v101_v22, %v1015_v7  ;;  %v104_v28 = vadd.s32 88, %v1005_v1  ;;  %v121_v31 = vadd.s32 224, %v1005_v1 }
  0x4a   :  { %774 = vmatpush3.bf16.msk.msra.mxu1 %vm773_vm7, %v933_v11  ;;  %vm743_vm10 = vmpackc.low %vm152_vm3, %vm151_vm2  ;;  %vm340_vm2 = vcmp.eq.s32.totalorder %v118_v21, %v1020_v8  ;;  %vm323_vm7 = vcmp.eq.s32.totalorder %v101_v22, %v1020_v8  ;;  %v122_v32 = vadd.s32 232, %v1005_v1  ;;  %v105_v33 = vadd.s32 96, %v1005_v1 }
  0x4b   :  { %744 = vmatprep.subr.msk.bf16.mxu0 %vm743_vm10, %v933_v11  ;;  %vm775_vm13 = vmpackc.low %vm338_vm6, %vm337_vm5  ;;  %vm138_vm5 = vcmp.eq.s32.totalorder %v102_v23, %v1015_v7  ;;  %vm155_vm10 = vcmp.eq.s32.totalorder %v119_v24, %v1015_v7  ;;  %v106_v34 = vadd.s32 104, %v1005_v1  ;;  %v123_v36 = vadd.s32 240, %v1005_v1 }
  0x4c   :  { %776 = vmatprep.subr.msk.bf16.mxu1 %vm775_vm13, %v933_v11  ;;  %vm745_vm0 = vmpackc.low %vm136_vm9, %vm135_vm8  ;;  %vm324_vm8 = vcmp.eq.s32.totalorder %v102_v23, %v1020_v8  ;;  %vm341_vm13 = vcmp.eq.s32.totalorder %v119_v24, %v1020_v8  ;;  %v124_v37 = vadd.s32 248, %v1005_v1  ;;  %v107_v38 = vadd.s32 112, %v1005_v1 }
  0x4d   :  { %746 = vmatpush3.bf16.msk.msra.mxu0 %vm745_vm0, %v933_v11  ;;  %vm777_vm3 = vmpackc.low %vm322_vm12, %vm321_vm11  ;;  %vm156_vm11 = vcmp.eq.s32.totalorder %v120_v25, %v1015_v7  ;;  %vm139_vm0 = vcmp.eq.s32.totalorder %v103_v27, %v1015_v7  ;;  %v108_v39 = vadd.s32 120, %v1005_v1  ;;  %v75_v43 = vmul.f32 3.912023, %v69_v41 }
  0x4e   :  { %778 = vmatpush3.bf16.msk.msra.mxu1 %vm777_vm3, %v933_v11  ;;  %vm747_vm6 = vmpackc.low %vm154_vm15, %vm153_vm14  ;;  %vm342_vm14 = vcmp.eq.s32.totalorder %v120_v25, %v1020_v8  ;;  %vm325_vm3 = vcmp.eq.s32.totalorder %v103_v27, %v1020_v8  ;;  %v76_v44 = vmul.f32 1.442695, %v74_v42  ;;  %v70_v48 = vsub.f32 %v66_v46, %v68_v40 }
  0x4f   :  { %748 = vmatprep.subr.msk.bf16.mxu0 %vm747_vm6, %v933_v11  ;;  %vm779_vm9 = vmpackc.low %vm340_vm2, %vm339_vm1  ;;  %vm140_vm1 = vcmp.eq.s32.totalorder %v104_v28, %v1015_v7  ;;  %vm157_vm6 = vcmp.eq.s32.totalorder %v121_v31, %v1015_v7  ;;  %v78_v45 = vmul.f32 1.442695, %v75_v43  ;;  %v71_v49 = vsub.f32 %v67_v47, %v69_v41 }
  0x50   :  { %780 = vmatprep.subr.msk.bf16.mxu1 %vm779_vm9, %v933_v11  ;;  %vm749_vm12 = vmpackc.low %vm138_vm5, %vm137_vm4  ;;  %vm326_vm4 = vcmp.eq.s32.totalorder %v104_v28, %v1020_v8  ;;  %vm343_vm9 = vcmp.eq.s32.totalorder %v121_v31, %v1020_v8  ;;  %806 = vpow2.f32 %v76_v44  ;;  %v72_v50 = vmul.f32 %v70_v48, %v70_v48 }
  0x51   :  { %750 = vmatpush3.bf16.msk.msra.mxu0 %vm749_vm12, %v933_v11  ;;  %vm781_vm15 = vmpackc.low %vm324_vm8, %vm323_vm7  ;;  %vm158_vm7 = vcmp.eq.s32.totalorder %v122_v32, %v1015_v7  ;;  %vm141_vm12 = vcmp.eq.s32.totalorder %v105_v33, %v1015_v7  ;;  %808 = vpow2.f32 %v78_v45  ;;  %v73_v51 = vmul.f32 %v71_v49, %v71_v49 }
  0x52   :  { %782 = vmatpush3.bf16.msk.msra.mxu1 %vm781_vm15, %v933_v11  ;;  %vm751_vm2 = vmpackc.low %vm156_vm11, %vm155_vm10  ;;  %vm344_vm10 = vcmp.eq.s32.totalorder %v122_v32, %v1020_v8  ;;  %vm327_vm15 = vcmp.eq.s32.totalorder %v105_v33, %v1020_v8 }
  0x53   :  { %752 = vmatprep.subr.msk.bf16.mxu0 %vm751_vm2, %v933_v11  ;;  %vm783_vm5 = vmpackc.low %vm342_vm14, %vm341_vm13  ;;  %vm142_vm13 = vcmp.eq.s32.totalorder %v106_v34, %v1015_v7  ;;  %vm159_vm2 = vcmp.eq.s32.totalorder %v123_v36, %v1015_v7 }
  0x54   :  { %784 = vmatprep.subr.msk.bf16.mxu1 %vm783_vm5, %v933_v11  ;;  %vm753_vm8 = vmpackc.low %vm140_vm1, %vm139_vm0  ;;  %vm328_vm0 = vcmp.eq.s32.totalorder %v106_v34, %v1020_v8  ;;  %vm345_vm5 = vcmp.eq.s32.totalorder %v123_v36, %v1020_v8 }
  0x55   :  { %754 = vmatpush3.bf16.msk.msra.mxu0 %vm753_vm8, %v933_v11  ;;  %vm785_vm11 = vmpackc.low %vm326_vm4, %vm325_vm3  ;;  %vm160_vm3 = vcmp.eq.s32.totalorder %v124_v37, %v1015_v7  ;;  %vm346_vm8 = vcmp.eq.s32.totalorder %v124_v37, %v1020_v8 }
  0x56   :  { %786 = vmatpush3.bf16.msk.msra.mxu1 %vm785_vm11, %v933_v11  ;;  %vm755_vm14 = vmpackc.low %vm158_vm7, %vm157_vm6  ;;  %vm143_vm7 = vcmp.eq.s32.totalorder %v107_v38, %v1015_v7  ;;  %vm144_vm11 = vcmp.eq.s32.totalorder %v108_v39, %v1015_v7 }
  0x57   :  { %756 = vmatprep.subr.msk.bf16.mxu0 %vm755_vm14, %v933_v11  ;;  %vm787_vm1 = vmpackc.low %vm344_vm10, %vm343_vm9  ;;  %vm329_vm10 = vcmp.eq.s32.totalorder %v107_v38, %v1020_v8  ;;  %vm330_vm14 = vcmp.eq.s32.totalorder %v108_v39, %v1020_v8 }
  0x58   :  { %788 = vmatprep.subr.msk.bf16.mxu1 %vm787_vm1, %v933_v11  ;;  %vm757_vm4 = vmpackc.low %vm142_vm13, %vm141_vm12 }
  0x59   :  { %758 = vmatpush3.bf16.msk.msra.mxu0 %vm757_vm4, %v933_v11  ;;  %vm789_vm6 = vmpackc.low %vm328_vm0, %vm327_vm15  ;;  %vm63_vm0 = vcmask 287744  }
  0x5a   :  { %790 = vmatpush3.bf16.msk.msra.mxu1 %vm789_vm6, %v933_v11  ;;  %vm759_vm9 = vmpackc.low %vm160_vm3, %vm159_vm2  ;;  %v807_v52 = vpop.eup %806  ;;  %64 = vst.msk [vmem:[#allocation8] sm:$0x3] %vm63_vm0, %v934_v57 }
  0x5b   :  { %760 = vmatprep.subr.msk.bf16.mxu0 %vm759_vm9, %v933_v11  ;;  %vm791_vm12 = vmpackc.low %vm346_vm8, %vm345_vm5  ;;  %v809_v53 = vpop.eup %808  ;;  %v80_v54 = vmul.f32 %v807_v52, %v72_v50  ;;  %65 = vst.msk [vmem:[#allocation8 + $0x2] sm:$0x3] %vm63_vm0, %v934_v57 }
  0x5c   :  { %792 = vmatprep.subr.msk.bf16.mxu1 %vm791_vm12, %v933_v11  ;;  %vm761_vm13 = vmpackc.low %vm144_vm11, %vm143_vm7  ;;  %v81_v55 = vmul.f32 %v809_v53, %v73_v51 }
  0x5d   :  { %762 = vmatpush3.bf16.msk.msra.mxu0 %vm761_vm13, %v933_v11  ;;  %vm793_vm15 = vmpackc.low %vm330_vm14, %vm329_vm10 }
  0x5e   :  { %794 = vmatpush3.bf16.msk.msra.mxu1 %vm793_vm15, %v933_v11  ;;  %v82_v56 = vadd.f32 %v81_v55, %v80_v54 }
  0x60   :  { %302 = vmatmul.mubr.f32.vlgmr.msra.gmra.mrb[0].mxu0 %v1097_v26  ;;  %85 = vst [vmem:[#allocation9] sm:$0xff] %v82_v56 }
  0x61   :  { %489 = vmatmul.mubr.f32.vlgmr.msra.gmra.mrb[0].mxu1 %v1120_v30 }
  0x62   :  { %887 = shalt.err (!%p884_p0)
}
  0x63   :  { %s888_s11 = scalar_lea.hbm %s1231_s5, 128 }
  0x64   :  { %p889_p1 = scmp.ne.s32.totalorder %s1231_s5, %s888_s11  ;;  %p892_p2 = scmp.lt.u32.totalorder %s888_s11, %s1231_s5 }
  0x66   :  { %p894_p3 = pnand %p892_p2, %p889_p1 }
  0x68   :  { %897 = shalt.err (!%p894_p3)
}
  0x69   :  { %517 = dma.vmem_to_hbm [thread:$0]  %s515_s7, 128, %s1231_s5, [#allocation10]  }
  0x6a   :  { %s936_s17 = smov [#allocation8]  }
  0x6b   :  { %s501_s18 = sshll.u32 %s936_s17, 4  ;;  %s502_s18 = int_to_ptr.vmem [resolvable:$true] %s501_s18 }
  0x6c   :  { %s898_s19 = scalar_lea.vmem %s502_s18, 64  ;;  %p903_p5 = scmp.lt.s32.totalorder %s502_s18, %s502_s18 }
  0x6d   :  { %p899_p4 = scmp.ne.s32.totalorder %s502_s18, %s898_s19  ;;  %p904_p6 = scmp.lt.s32.totalorder %s898_s19, %s898_s19 }
  0x6f   :  { %p905_p7 = por %p904_p6, %p903_p5 }
  0x71   :  { %p906_p8 = pnand %p905_p7, %p899_p4 }
 0x133   :  { %v693_v58 = vpop.f32.mrb[0].mxu0 }
 0x134   :  { %v728_v59 = vpop.f32.mrb[0].mxu1  ;;  %v694_v60 = vpop.f32.mrb[1].mxu0 }
 0x135   :  { %v695_v61 = vadd.f32 %v694_v60, %v693_v58  ;;  %v729_v62 = vpop.f32.mrb[1].mxu1 }
 0x136   :  { %v730_v63 = vadd.f32 %v729_v62, %v728_v59 }
 0x137   :  { %308 = vst.msk [vmem:[#allocation8] sm:$0x3] %vm63_vm0, %v695_v61 }
 0x138   :  { %495 = vst.msk [vmem:[#allocation8 + $0x2] sm:$0x3] %vm63_vm0, %v730_v63 }
 0x139   :  { %909 = shalt.err (!%p906_p8)
}
 0x13a   :  { %s910_s22 = scalar_lea.hbm %s1230_s4, 64 }
 0x13b   :  { %p911_p9 = scmp.ne.s32.totalorder %s1230_s4, %s910_s22  ;;  %p914_p10 = scmp.lt.u32.totalorder %s910_s22, %s1230_s4 }
 0x13d   :  { %p916_p11 = pnand %p914_p10, %p911_p9 }
 0x13f   :  { %919 = shalt.err (!%p916_p11)
}
 0x140   :  { %s937_s0 = smov 32   ;;  %s938_s21 = smov 2  }
 0x141   :  { %507 = dma.vmem_to_hbm [thread:$0]  %s502_s18, 64, %s1230_s4, [#allocation4], %s937_s0, %s937_s0, %s938_s21  }
 0x142   :  { %924 = dma.done.wait [#allocation4], 64  }
 0x143   :  { %925 = vsyncadd [#allocation4], 4294967232 }
 0x144   :  { %926 = dma.done.wait [#allocation10], 128  }
 0x145   :  { %927 = vsyncadd [#allocation10], 4294967168 }
 0x146   :  { %524 = vsyncpa [#allocation3], 1 }
 0x147   :  { %525 = vsyncpa [#allocation6], 1 }
 0x148   :  { %526 = vsyncpa [#allocation4], 1 }
 0x149   :  { %527 = vsyncpa [#allocation10], 1 }

</bundles_post_ra>
